<compile_context>
chip_gen: v6e
topology: v6e:2x2x1
jax: 0.10.0
libtpu: 0.0.40
codegen_flags: <defaults>
</compile_context>

<pallas_src>
import jax
import jax.numpy as jnp
from jax.experimental import pallas as pl
from jax.experimental.pallas import tpu as pltpu

# ---- dimensions fixed by the PyTorch module ----
_EMB_ROWS = 1000
_EMB_D = 8
_N_WIDE = 8                         # wide id slots  -> 64 features
_N_DEEP = 4                         # deep id slots  -> 32 features
_N_SLOTS = _N_WIDE + _N_DEEP        # 12 embedding slots
_DENSE_F = 4
_K = _N_SLOTS * _EMB_D + _DENSE_F   # 100
_NCLS = 2

# ---- kernel I/O layout (feature-major, batch on the lane axis) ----
_IN_ROWS = _NCLS * _N_SLOTS + _DENSE_F   # 24 projected contributions + 4 dense = 28
_MM_ROWS = 8                             # fold matrix padded to 8 rows (MXU-friendly M)
_OUT_ROWS = 5                            # [logit0, logit1, p0, p1, argmax]

# ---- tiling ----
_MAX_TB = 16384                          # lanes per grid step (multiple of 128)
_VMEM_LIMIT = 32 * 1024 * 1024


def _round_up(n, m):
    return ((n + m - 1) // m) * m


def _pick_tb(batch):
    if batch <= 1024:
        return batch                      # single block; lane extent == full array dim
    # >= 2 grid steps (use both v7x TensorCores); lane extent a multiple of 128,
    # ragged last block is masked by Pallas.
    return min(_MAX_TB, _round_up(pl.cdiv(batch, 2), 128))


# ------------------------- Pallas kernel -------------------------
def _head_kernel(x_ref, m_ref, b_ref, o_ref):
    # One MXU matmul folds (a) the sum over the 12 per-slot projected-embedding
    # contributions and (b) the 4-wide dense projection:  logits^T = M @ X_slab.
    lg = jnp.dot(m_ref[...], x_ref[...],
                 preferred_element_type=jnp.float32)[0:_NCLS, :]   # (2, tb)
    lg = lg + b_ref[...]                                           # + bias (2, 1)

    # Analytic 2-class softmax / argmax on lane-dense (1, tb) rows:
    # softmax([l0, l1]) == [sigmoid(-d), sigmoid(d)] with d = l1 - l0.
    # No cross-lane XLU reductions, EUP exp + exact divide (keeps 1e-5 parity).
    d = lg[1:2, :] - lg[0:1, :]
    p1 = 1.0 / (1.0 + jnp.exp(-d))
    p0 = 1.0 / (1.0 + jnp.exp(d))

    # Lane-dense transposed output slab (rows: l0, l1, p0, p1, argmax).
    o_ref[0:2, :] = lg
    o_ref[2:3, :] = p0
    o_ref[3:4, :] = p1
    o_ref[4:5, :] = (d > 0.0).astype(jnp.float32)   # torch.argmax tie-break -> class 0


def _fused_head(x_slab, m_fold, b2):
    rows, batch = x_slab.shape            # (28, B)
    tb = _pick_tb(batch)
    grid = (pl.cdiv(batch, tb),)

    cost = pl.CostEstimate(
        flops=2 * batch * rows * _MM_ROWS,
        transcendentals=2 * batch,
        bytes_accessed=4 * (batch * rows + batch * _OUT_ROWS
                            + m_fold.size + b2.size),
    )

    return pl.pallas_call(
        _head_kernel,
        out_shape=jax.ShapeDtypeStruct((_OUT_ROWS, batch), jnp.float32),
        grid=grid,
        in_specs=[
            pl.BlockSpec((rows, tb), lambda i: (0, i)),          # activation slab
            pl.BlockSpec((_MM_ROWS, rows), lambda i: (0, 0)),    # fold matrix (resident)
            pl.BlockSpec((_NCLS, 1), lambda i: (0, 0)),          # bias (resident)
        ],
        out_specs=pl.BlockSpec((_OUT_ROWS, tb), lambda i: (0, i)),
        compiler_params=pltpu.CompilerParams(
            dimension_semantics=("parallel",),
            vmem_limit_bytes=_VMEM_LIMIT,
        ),
        cost_estimate=cost,
    )(x_slab, m_fold, b2)


# ------------------------- Params (PyTorch-equivalent init + folded tables) -------------------------
def init_params(key):
    k_emb, k_w, k_b = jax.random.split(key, 3)
    # nn.Embedding(1000, 8): N(0, 1) init
    embedding = jax.random.normal(k_emb, (_EMB_ROWS, _EMB_D), dtype=jnp.float32)
    # nn.Linear(100, 2): uniform(-1/sqrt(100), 1/sqrt(100))
    bound = 1.0 / jnp.sqrt(float(_K))
    fc_w = jax.random.uniform(k_w, (_NCLS, _K), jnp.float32, -bound, bound)
    fc_b = jax.random.uniform(k_b, (_NCLS,), jnp.float32, -bound, bound)

    # --- fold the embedding columns of the Linear into per-slot projected tables ---
    # t_proj[j, v, c] = sum_e embedding[v, e] * fc_w[c, 8*j + e]   -> (12, 1000, 2)
    w_blocks = fc_w[:, : _N_SLOTS * _EMB_D].reshape(_NCLS, _N_SLOTS, _EMB_D)
    t_proj = jnp.einsum('ve,cje->jvc', embedding, w_blocks)

    # Fold matrix: row c sums that class's 12 contributions and applies the dense
    # weights; rows 2..7 are zero padding for an MXU-friendly M=8.
    m_fold = jnp.zeros((_MM_ROWS, _IN_ROWS), jnp.float32)
    m_fold = m_fold.at[0, 0:_N_SLOTS].set(1.0)
    m_fold = m_fold.at[1, _N_SLOTS:2 * _N_SLOTS].set(1.0)
    m_fold = m_fold.at[0:_NCLS, 2 * _N_SLOTS:].set(fc_w[:, _N_SLOTS * _EMB_D:])

    b2 = fc_b.reshape(_NCLS, 1)

    return {'embedding': embedding, 'fc_w': fc_w, 'fc_b': fc_b,
            't_proj': t_proj, 'm_fold': m_fold, 'b2': b2}


# ------------------------- Forward (glue in plain JAX + Pallas head) -------------------------
def net_forward(x_wide, x_deep, x_dense, params):
    batch = x_wide.shape[0]
    # Per-slot lookup of the PROJECTED tables (2 floats/slot instead of 8-wide rows).
    # TODO(synk): move this gather into the kernel (jnp.take on a VMEM-resident
    # (12,1000,2) table, or per-row DMA via PrefetchScalarGridSpec) once Mosaic's
    # dynamic gather over ~1000 sublanes is reliable; indices would then be the
    # only per-row HBM read.
    idx = jnp.concatenate([x_wide.astype(jnp.int32), x_deep.astype(jnp.int32)],
                          axis=1)                                   # (B, 12)
    g = jnp.take_along_axis(params['t_proj'], idx.T[:, :, None], axis=1)  # (12, B, 2)
    contrib_t = jnp.transpose(g, (2, 0, 1)).reshape(_NCLS * _N_SLOTS, batch)  # (24, B)
    x_slab = jnp.concatenate(
        [contrib_t, x_dense.astype(jnp.float32).T], axis=0)          # (28, B)

    out = _fused_head(x_slab, params['m_fold'], params['b2'])        # (5, B)

    logits = out[0:2, :].T                                           # (B, 2)
    probs = out[2:4, :].T                                            # (B, 2)
    tgt = out[4:5, :].T.astype(jnp.int32)                            # (B, 1)
    return {'logits': logits, 'target_classes': tgt, 'probabilites': probs}


# ------------------------- Pure-JAX reference (correctness check) -------------------------
def net_forward_ref(x_wide, x_deep, x_dense, params):
    emb = params['embedding']
    xw = emb[x_wide.astype(jnp.int32)].reshape(-1, _N_WIDE * _EMB_D)
    xd = emb[x_deep.astype(jnp.int32)].reshape(-1, _N_DEEP * _EMB_D)
    X = jnp.concatenate([xw, xd, x_dense.astype(jnp.float32)], axis=1)
    logits = X @ params['fc_w'].T + params['fc_b']
    probs = jax.nn.softmax(logits, axis=1)
    tgt = jnp.argmax(logits, axis=1)[:, None].astype(jnp.int32)
    return {'logits': logits, 'target_classes': tgt, 'probabilites': probs}


if __name__ == "__main__":
    key = jax.random.PRNGKey(0)
    k_params, k_wide, k_deep, k_dense = jax.random.split(key, 4)

    params = init_params(k_params)

    B = 8
    x_wide = jax.random.randint(k_wide, (B, _N_WIDE), 0, _EMB_ROWS, dtype=jnp.int32)
    x_deep = jax.random.randint(k_deep, (B, _N_DEEP), 0, _EMB_ROWS, dtype=jnp.int32)
    x_dense = jax.random.normal(k_dense, (B, _DENSE_F), dtype=jnp.float32)

    out = jax.jit(net_forward)(x_wide, x_deep, x_dense, params)
    jax.block_until_ready(out)

    ref = net_forward_ref(x_wide, x_deep, x_dense, params)
    jax.block_until_ready(ref)

    assert out['logits'].shape == (B, _NCLS)
    assert out['probabilites'].shape == (B, _NCLS)
    assert out['target_classes'].shape == (B, 1)
    assert jnp.allclose(out['logits'], ref['logits'], atol=1e-5, rtol=1e-5)
    assert jnp.allclose(out['probabilites'], ref['probabilites'], atol=1e-5, rtol=1e-5)
    assert jnp.array_equal(out['target_classes'], ref['target_classes'])
    print("KERNEL_OK")
</pallas_src>

<mosaic_0001>
module attributes {stable_mosaic.version = 11 : i64} {
  func.func @_head_kernel(%arg0: i32, %arg1: memref<28x8xf32, #tpu.memory_space<vmem>>, %arg2: memref<8x28xf32, #tpu.memory_space<vmem>>, %arg3: memref<2x1xf32, #tpu.memory_space<vmem>>, %arg4: memref<5x8xf32, #tpu.memory_space<vmem>>) attributes {dimension_semantics = [#tpu.dimension_semantics<parallel>], iteration_bounds = array<i64: 1>, scalar_prefetch = 0 : i64, scratch_operands = 0 : i64, tpu.core_type = #tpu.core_type<tc>, window_params = [{transform_indices = @transform_0, window_bounds = array<i64: 28, 8>}, {pipeline_mode = #tpu.pipeline_mode<synchronous>, transform_indices = @transform_1, window_bounds = array<i64: 8, 28>}, {pipeline_mode = #tpu.pipeline_mode<synchronous>, transform_indices = @transform_2, window_bounds = array<i64: 2, 1>}, {transform_indices = @transform_3, window_bounds = array<i64: 5, 8>}]} {
    %c0 = arith.constant 0 : index
    %c0_0 = arith.constant 0 : index
    %0 = vector.load %arg2[%c0, %c0_0] : memref<8x28xf32, #tpu.memory_space<vmem>>, vector<8x28xf32>
    %c0_1 = arith.constant 0 : index
    %c0_2 = arith.constant 0 : index
    %1 = vector.load %arg1[%c0_1, %c0_2] : memref<28x8xf32, #tpu.memory_space<vmem>>, vector<28x8xf32>
    %cst = arith.constant dense<0.000000e+00> : vector<8x8xf32>
    %2 = tpu.matmul %0, %1, %cst {dimension_numbers = #tpu.dot_dimension_numbers<[1], [0], [0], [1], [0, 0, 1, 1], [], []>} : vector<8x28xf32>, vector<28x8xf32>, vector<8x8xf32> -> vector<8x8xf32>
    %3 = vector.extract_strided_slice %2 {offsets = [0, 0], sizes = [2, 8], strides = [1, 1]} : vector<8x8xf32> to vector<2x8xf32>
    %c0_3 = arith.constant 0 : index
    %c0_4 = arith.constant 0 : index
    %4 = vector.load %arg3[%c0_3, %c0_4] : memref<2x1xf32, #tpu.memory_space<vmem>>, vector<2x1xf32>
    %5 = vector.broadcast %4 : vector<2x1xf32> to vector<2x8xf32>
    %6 = arith.addf %3, %5 : vector<2x8xf32>
    %7 = vector.extract_strided_slice %6 {offsets = [1, 0], sizes = [1, 8], strides = [1, 1]} : vector<2x8xf32> to vector<1x8xf32>
    %8 = vector.extract_strided_slice %6 {offsets = [0, 0], sizes = [1, 8], strides = [1, 1]} : vector<2x8xf32> to vector<1x8xf32>
    %9 = arith.subf %7, %8 : vector<1x8xf32>
    %cst_5 = arith.constant 0.000000e+00 : f32
    %10 = vector.broadcast %cst_5 : f32 to vector<1x8xf32>
    %11 = arith.subf %10, %9 : vector<1x8xf32>
    %12 = math.exp %11 : vector<1x8xf32>
    %cst_6 = arith.constant 1.000000e+00 : f32
    %13 = vector.broadcast %cst_6 : f32 to vector<1x8xf32>
    %14 = arith.addf %13, %12 : vector<1x8xf32>
    %cst_7 = arith.constant 1.000000e+00 : f32
    %15 = vector.broadcast %cst_7 : f32 to vector<1x8xf32>
    %16 = arith.divf %15, %14 : vector<1x8xf32>
    %17 = math.exp %9 : vector<1x8xf32>
    %cst_8 = arith.constant 1.000000e+00 : f32
    %18 = vector.broadcast %cst_8 : f32 to vector<1x8xf32>
    %19 = arith.addf %18, %17 : vector<1x8xf32>
    %cst_9 = arith.constant 1.000000e+00 : f32
    %20 = vector.broadcast %cst_9 : f32 to vector<1x8xf32>
    %21 = arith.divf %20, %19 : vector<1x8xf32>
    %c0_10 = arith.constant 0 : index
    %c0_11 = arith.constant 0 : index
    %22 = vector.load %arg4[%c0_10, %c0_11] : memref<5x8xf32, #tpu.memory_space<vmem>>, vector<2x8xf32>
    tpu.vector_store %arg4[%c0_10, %c0_11], %6 {strides = array<i32>} : memref<5x8xf32, #tpu.memory_space<vmem>>, vector<2x8xf32>,
    %c2 = arith.constant 2 : index
    %c0_12 = arith.constant 0 : index
    %23 = vector.load %arg4[%c2, %c0_12] : memref<5x8xf32, #tpu.memory_space<vmem>>, vector<1x8xf32>
    tpu.vector_store %arg4[%c2, %c0_12], %21 {strides = array<i32>} : memref<5x8xf32, #tpu.memory_space<vmem>>, vector<1x8xf32>,
    %c3 = arith.constant 3 : index
    %c0_13 = arith.constant 0 : index
    %24 = vector.load %arg4[%c3, %c0_13] : memref<5x8xf32, #tpu.memory_space<vmem>>, vector<1x8xf32>
    tpu.vector_store %arg4[%c3, %c0_13], %16 {strides = array<i32>} : memref<5x8xf32, #tpu.memory_space<vmem>>, vector<1x8xf32>,
    %cst_14 = arith.constant 0.000000e+00 : f32
    %25 = vector.broadcast %cst_14 : f32 to vector<1x8xf32>
    %26 = arith.cmpf ogt, %9, %25 : vector<1x8xf32>
    %27 = arith.extui %26 : vector<1x8xi1> to vector<1x8xi32>
    %28 = arith.sitofp %27 : vector<1x8xi32> to vector<1x8xf32>
    %c4 = arith.constant 4 : index
    %c0_15 = arith.constant 0 : index
    %29 = vector.load %arg4[%c4, %c0_15] : memref<5x8xf32, #tpu.memory_space<vmem>>, vector<1x8xf32>
    tpu.vector_store %arg4[%c4, %c0_15], %28 {strides = array<i32>} : memref<5x8xf32, #tpu.memory_space<vmem>>, vector<1x8xf32>,
    return
  }
  func.func @transform_0(%arg0: i32) -> (i32, i32) {
    %c0_i32 = arith.constant 0 : i32
    %c0_i32_0 = arith.constant 0 : i32
    return %c0_i32, %arg0 : i32, i32
  }
  func.func @transform_1(%arg0: i32) -> (i32, i32) {
    %c0_i32 = arith.constant 0 : i32
    %c0_i32_0 = arith.constant 0 : i32
    %c0_i32_1 = arith.constant 0 : i32
    return %c0_i32, %c0_i32_0 : i32, i32
  }
  func.func @transform_2(%arg0: i32) -> (i32, i32) {
    %c0_i32 = arith.constant 0 : i32
    %c0_i32_0 = arith.constant 0 : i32
    %c0_i32_1 = arith.constant 0 : i32
    return %c0_i32, %c0_i32_0 : i32, i32
  }
  func.func @transform_3(%arg0: i32) -> (i32, i32) {
    %c0_i32 = arith.constant 0 : i32
    %c0_i32_0 = arith.constant 0 : i32
    return %c0_i32, %arg0 : i32, i32
  }
}

</mosaic_0001>

<bundles_post_ra>
// kernel: net_forward.1
= control target key start
LH: loop header
LB: loop body
LE: loop exit
PB: predicated region body
PF: predicated region fallthrough
CT: control target
= control target key end

     0   :  { %vm23_vm0 = vcmask 1043456   ;;  %v163_v0 = vmov 0.0   ;;  %vm164_vm1 = vmmov 0   ;;  %v165_v3 = vmov 0   ;;  %s219_s0 = inlined_call_operand.vmem [shape: f32[28,8], index: 0, kind: input, shape index: {}]   ;;  %s220_s2 = inlined_call_operand.vmem [shape: f32[2,1], index: 2, kind: input, shape index: {}]   ;;  %s221_s1 = inlined_call_operand.vmem [shape: f32[8,28], index: 1, kind: input, shape index: {}]   ;;  %s222_s3 = inlined_call_operand.vmem [shape: f32[5,8], index: 3, kind: output, shape index: {}]  }
   0x1   :  { %140 = vmatprep.subr.mxu0 %v163_v0  ;;  %v18_v1 = vld [vmem:[%s219_s0 + $0x18] sm:$0xf]  ;;  %v17_v2 = vld [vmem:[%s219_s0 + $0x10] sm:$0xff]  ;;  %148 = vmatprep.mubr.msk.f32.mxu0 %vm164_vm1, %v163_v0  ;;  %v97_v4 = vld [vmem:[%s220_s2] sm:$0x3]  ;;  %vm19_vm2 = vcmask 228352  }
   0x2   :  { %141 = vmatpush3.msk.msra.mxu0 %vm23_vm0, %v18_v1  ;;  %154 = vset.pattern.permute.xlu0 %v165_v3  ;;  %v16_v5 = vld [vmem:[%s219_s0 + $0x8] sm:$0xff]  ;;  %v15_v6 = vld [vmem:[%s219_s0] sm:$0xff]  ;;  %vm119_vm3 = vcmask 58368   ;;  %vm121_vm4 = vcmask 58369  }
   0x3   :  { %142 = vmatprep.subr.mxu0 %v163_v0  ;;  %100 = vperm.xlu0 %154, %v97_v4   ;;  %v14_v7 = vld [vmem:[%s221_s1] sm:$0xff] }
   0x4   :  { %143 = vmatpush3.msra.mxu0 %v17_v2 }
   0x5   :  { %144 = vmatprep.subr.mxu0 %v163_v0 }
   0x6   :  { %145 = vmatpush3.msra.mxu0 %v16_v5 }
   0x7   :  { %146 = vmatprep.subr.mxu0 %v163_v0 }
   0x8   :  { %147 = vmatpush3.msra.mxu0 %v15_v6 }
   0x9   :  { %149 = vmatmul.mubr.msk.f32.vlgmr.msra.gmra.mxu0 %vm19_vm2, %v14_v7 }
  0x7e   :  { %v101_v8 = vpop.permute.xlu0 %100 }
  0xc9   :  { %v93_v9 = vpop.f32.mrf.mxu0 }
  0xca   :  { %v103_v10 = vadd.f32 %v101_v8, %v93_v9 }
  0xcb   :  { %v150_v11 = vpop.f32.mrf.mxu0 }
  0xcc   :  { %v105_v12 = vrot.slane %v103_v10, 7  ;;  %120 = vst.msk [vmem:[%s222_s3] sm:$0x3] %vm119_vm3, %v103_v10 }
  0xce   :  { %v107_v13 = vsub.f32 %v103_v10, %v105_v12 }
  0xd0   :  { %v108_v14 = vsub.f32 0.0, %v107_v13  ;;  %v114_v15 = vmul.f32 1.442695, %v107_v13  ;;  %vm124_vm5 = vcmp.gt.f32.partialorder %v107_v13, 0.0 }
  0xd1   :  { %v134_v16 = vsel %vm124_vm5, 1.0, %v163_v0 }
  0xd2   :  { %v109_v17 = vmul.f32 1.442695, %v108_v14  ;;  %155 = vpow2.f32 %v114_v15  ;;  %127 = vst.msk [vmem:[%s222_s3 + $0x3] sm:$0x2] %vm121_vm4, %v134_v16 }
  0xd4   :  { %157 = vpow2.f32 %v109_v17 }
  0xdf   :  { %v156_v18 = vpop.eup %155 }
  0xe0   :  { %v116_v19 = vadd.f32 1.0, %v156_v18 }
  0xe1   :  { %v158_v20 = vpop.eup %157 }
  0xe2   :  { %v111_v21 = vadd.f32 1.0, %v158_v20  ;;  %159 = vrcp.f32 %v116_v19 }
  0xe4   :  { %161 = vrcp.f32 %v111_v21 }
  0xef   :  { %v160_v22 = vpop.eup %159 }
  0xf0   :  { %122 = vst.msk [vmem:[%s222_s3 + $0x1] sm:$0x2] %vm121_vm4, %v160_v22 }
  0xf1   :  { %v162_v23 = vpop.eup %161 }
  0xf2   :  { %123 = vst.msk [vmem:[%s222_s3 + $0x2] sm:$0x2] %vm121_vm4, %v162_v23 }

</bundles_post_ra>
